<compile_context>
chip_gen: v6e
topology: v6e:2x2x1
jax: 0.10.0
libtpu: 0.0.40
codegen_flags: <defaults>
</compile_context>

<pallas_src>
import jax
import jax.numpy as jnp
from jax.experimental import pallas as pl
from jax.experimental.pallas import tpu as pltpu

_LANE = 128
_SUBLANE = 8
_HIDDEN = 512
_OUT = 2
_O_PAD = _LANE  # 2 real output columns padded to one 128-wide lane group


def _round_up(n, m):
    return ((n + m - 1) // m) * m


def _mlp_kernel(x_ref, w1_ref, b1_ref, w2_ref, b2_ref, w3_ref, b3_ref, o_ref):
    # Layer 1: Linear(F -> 512) + ReLU.  x arrives f32; cast to bf16 here (cheap VPU
    # op on a small tile) instead of a separate XLA cast/pad pass over x in HBM.
    x = x_ref[...].astype(jnp.bfloat16)
    h = jnp.dot(x, w1_ref[...], preferred_element_type=jnp.float32)
    h = jnp.maximum(h + b1_ref[...], 0.0)
    # dropout == identity (eval/inference mode)

    # Layer 2: Linear(512 -> 512) + ReLU (bf16 MXU inputs, f32 accumulation).
    h = jnp.dot(h.astype(jnp.bfloat16), w2_ref[...],
                preferred_element_type=jnp.float32)
    h = jnp.maximum(h + b2_ref[...], 0.0)

    # Layer 3: Linear(512 -> 2), kept fully in f32 (tiny N; zero-padded output
    # columns are sliced off outside the kernel).
    out = jnp.dot(h, w3_ref[...], preferred_element_type=jnp.float32)
    o_ref[...] = (out + b3_ref[...]).astype(o_ref.dtype)


def prepare_params(w1, b1, w2, b2, w3, b3):
    """One-time conversion of [in, out]-layout f32 params into kernel layout.

    Done outside the per-call jitted forward so the forward never pays a host-side
    cast/pad round trip over the weights.
    """
    w1k = w1.astype(jnp.bfloat16)                        # [F, 512]  bf16
    w2k = w2.astype(jnp.bfloat16)                        # [512, 512] bf16
    w3k = jnp.zeros((w3.shape[0], _O_PAD), jnp.float32).at[:, :_OUT].set(
        w3.astype(jnp.float32))                          # [512, 128] f32
    b1k = jnp.asarray(b1, jnp.float32).reshape(1, -1)    # [1, 512]
    b2k = jnp.asarray(b2, jnp.float32).reshape(1, -1)    # [1, 512]
    b3k = jnp.zeros((1, _O_PAD), jnp.float32).at[:, :_OUT].set(
        jnp.asarray(b3, jnp.float32).reshape(1, -1))     # [1, 128]
    return w1k, b1k, w2k, b2k, w3k, b3k


def _pick_tm(B):
    # Per-grid-step overhead ~0.35 us; 512-row tiles sit near the measured roofline
    # knee.  Keep >=2 grid steps at medium B so the "parallel" batch axis can shard
    # across v7x's two TensorCores; at small B use one step (weight DMA dominates,
    # two cores would each re-DMA the weights).
    if B >= 1024:
        return 512
    if B >= 512:
        return 256
    if B >= 256:
        return 128
    return B  # single grid step; block dim == full batch dim (always legal)


@jax.jit
def imitation_net_forward(x, w1, b1, w2, b2, w3, b3):
    B, F = x.shape
    H = w1.shape[1]

    TM = _pick_tm(B)
    grid = (pl.cdiv(B, TM),)

    # Weights / biases: constant index_map -> resident in VMEM, DMA'd once.
    def resident(shape):
        return pl.BlockSpec(shape, lambda i: (0,) * len(shape))

    flops = 2 * B * (F * H + H * H + H * _O_PAD)
    bytes_accessed = (
        x.size * 4                                    # f32 x
        + (w1.size + w2.size) * 2                     # bf16 weights (layers 1-2)
        + w3.size * 4                                 # f32 layer-3 weight
        + (b1.size + b2.size + b3.size) * 4           # f32 biases
        + B * _O_PAD * 4                              # f32 output
    )

    out = pl.pallas_call(
        _mlp_kernel,
        out_shape=jax.ShapeDtypeStruct((B, _O_PAD), jnp.float32),
        grid=grid,
        in_specs=[
            pl.BlockSpec((TM, F), lambda i: (i, 0)),  # batch-tiled x, unpadded F
            resident(w1.shape),
            resident(b1.shape),
            resident(w2.shape),
            resident(b2.shape),
            resident(w3.shape),
            resident(b3.shape),
        ],
        out_specs=pl.BlockSpec((TM, _O_PAD), lambda i: (i, 0)),
        compiler_params=pltpu.CompilerParams(
            dimension_semantics=("parallel",),
        ),
        cost_estimate=pl.CostEstimate(
            flops=flops, transcendentals=0, bytes_accessed=bytes_accessed),
    )(x, w1, b1, w2, b2, w3, b3)

    return out[:, :_OUT]


def init_params(key, features, hidden=_HIDDEN, out_dim=_OUT):
    """Deterministic init mimicking torch.nn.Linear default U(-1/sqrt(fan_in), ...)."""
    def linear(k, fan_in, fan_out):
        kw, kb = jax.random.split(k)
        bound = 1.0 / jnp.sqrt(jnp.float32(fan_in))
        # stored as [in, out] (transposed vs torch's [out, in])
        w = jax.random.uniform(kw, (fan_in, fan_out), jnp.float32, -bound, bound)
        b = jax.random.uniform(kb, (1, fan_out), jnp.float32, -bound, bound)
        return w, b

    k1, k2, k3 = jax.random.split(key, 3)
    w1, b1 = linear(k1, features, hidden)
    w2, b2 = linear(k2, hidden, hidden)
    w3, b3 = linear(k3, hidden, out_dim)
    return w1, b1, w2, b2, w3, b3


def reference_forward(x, w1, b1, w2, b2, w3, b3):
    h = jnp.maximum(x @ w1 + b1, 0.0)
    h = jnp.maximum(h @ w2 + b2, 0.0)
    return h @ w3 + b3


if __name__ == "__main__":
    key = jax.random.PRNGKey(0)
    kx, kp = jax.random.split(key)

    batch, features = 8, 32
    x = jax.random.normal(kx, (batch, features), jnp.float32)
    raw_params = init_params(kp, features)

    kernel_params = prepare_params(*raw_params)       # one-time weight conversion
    out = imitation_net_forward(x, *kernel_params)
    out = jax.block_until_ready(out)

    ref = reference_forward(x, *raw_params)
    assert out.shape == (batch, _OUT), out.shape
    # layers 1-2 run in bf16 on the MXU -> loosened tolerance vs. the f32 reference.
    assert jnp.allclose(out, ref, atol=5e-2, rtol=5e-2), "mismatch vs reference"

    print("KERNEL_OK")
</pallas_src>

<mosaic_0001>
module attributes {stable_mosaic.version = 11 : i64} {
  func.func @_mlp_kernel(%arg0: i32, %arg1: memref<8x32xf32, #tpu.memory_space<vmem>>, %arg2: memref<32x512xbf16, #tpu.memory_space<vmem>>, %arg3: memref<1x512xf32, #tpu.memory_space<vmem>>, %arg4: memref<512x512xbf16, #tpu.memory_space<vmem>>, %arg5: memref<1x512xf32, #tpu.memory_space<vmem>>, %arg6: memref<512x128xf32, #tpu.memory_space<vmem>>, %arg7: memref<1x128xf32, #tpu.memory_space<vmem>>, %arg8: memref<8x128xf32, #tpu.memory_space<vmem>>) attributes {dimension_semantics = [#tpu.dimension_semantics<parallel>], iteration_bounds = array<i64: 1>, scalar_prefetch = 0 : i64, scratch_operands = 0 : i64, tpu.core_type = #tpu.core_type<tc>, window_params = [{transform_indices = @transform_0, window_bounds = array<i64: 8, 32>}, {pipeline_mode = #tpu.pipeline_mode<synchronous>, transform_indices = @transform_1, window_bounds = array<i64: 32, 512>}, {pipeline_mode = #tpu.pipeline_mode<synchronous>, transform_indices = @transform_2, window_bounds = array<i64: 1, 512>}, {pipeline_mode = #tpu.pipeline_mode<synchronous>, transform_indices = @transform_3, window_bounds = array<i64: 512, 512>}, {pipeline_mode = #tpu.pipeline_mode<synchronous>, transform_indices = @transform_4, window_bounds = array<i64: 1, 512>}, {pipeline_mode = #tpu.pipeline_mode<synchronous>, transform_indices = @transform_5, window_bounds = array<i64: 512, 128>}, {pipeline_mode = #tpu.pipeline_mode<synchronous>, transform_indices = @transform_6, window_bounds = array<i64: 1, 128>}, {transform_indices = @transform_7, window_bounds = array<i64: 8, 128>}]} {
    %c0 = arith.constant 0 : index
    %c0_0 = arith.constant 0 : index
    %0 = vector.load %arg1[%c0, %c0_0] : memref<8x32xf32, #tpu.memory_space<vmem>>, vector<8x32xf32>
    %1 = arith.truncf %0 : vector<8x32xf32> to vector<8x32xbf16>
    %c0_1 = arith.constant 0 : index
    %c0_2 = arith.constant 0 : index
    %2 = vector.load %arg2[%c0_1, %c0_2] : memref<32x512xbf16, #tpu.memory_space<vmem>>, vector<32x512xbf16>
    %cst = arith.constant dense<0.000000e+00> : vector<8x512xf32>
    %3 = tpu.matmul %1, %2, %cst {dimension_numbers = #tpu.dot_dimension_numbers<[1], [0], [0], [1], [0, 0, 1, 1], [], []>} : vector<8x32xbf16>, vector<32x512xbf16>, vector<8x512xf32> -> vector<8x512xf32>
    %c0_3 = arith.constant 0 : index
    %c0_4 = arith.constant 0 : index
    %4 = vector.load %arg3[%c0_3, %c0_4] : memref<1x512xf32, #tpu.memory_space<vmem>>, vector<1x512xf32>
    %5 = vector.broadcast %4 : vector<1x512xf32> to vector<8x512xf32>
    %6 = arith.addf %3, %5 : vector<8x512xf32>
    %cst_5 = arith.constant 0.000000e+00 : f32
    %7 = vector.broadcast %cst_5 : f32 to vector<8x512xf32>
    %8 = arith.maximumf %6, %7 : vector<8x512xf32>
    %9 = arith.truncf %8 : vector<8x512xf32> to vector<8x512xbf16>
    %c0_6 = arith.constant 0 : index
    %c0_7 = arith.constant 0 : index
    %10 = vector.load %arg4[%c0_6, %c0_7] : memref<512x512xbf16, #tpu.memory_space<vmem>>, vector<512x512xbf16>
    %cst_8 = arith.constant dense<0.000000e+00> : vector<8x512xf32>
    %11 = tpu.matmul %9, %10, %cst_8 {dimension_numbers = #tpu.dot_dimension_numbers<[1], [0], [0], [1], [0, 0, 1, 1], [], []>} : vector<8x512xbf16>, vector<512x512xbf16>, vector<8x512xf32> -> vector<8x512xf32>
    %c0_9 = arith.constant 0 : index
    %c0_10 = arith.constant 0 : index
    %12 = vector.load %arg5[%c0_9, %c0_10] : memref<1x512xf32, #tpu.memory_space<vmem>>, vector<1x512xf32>
    %13 = vector.broadcast %12 : vector<1x512xf32> to vector<8x512xf32>
    %14 = arith.addf %11, %13 : vector<8x512xf32>
    %cst_11 = arith.constant 0.000000e+00 : f32
    %15 = vector.broadcast %cst_11 : f32 to vector<8x512xf32>
    %16 = arith.maximumf %14, %15 : vector<8x512xf32>
    %c0_12 = arith.constant 0 : index
    %c0_13 = arith.constant 0 : index
    %17 = vector.load %arg6[%c0_12, %c0_13] : memref<512x128xf32, #tpu.memory_space<vmem>>, vector<512x128xf32>
    %cst_14 = arith.constant dense<0.000000e+00> : vector<8x128xf32>
    %18 = tpu.matmul %16, %17, %cst_14 {dimension_numbers = #tpu.dot_dimension_numbers<[1], [0], [0], [1], [0, 0, 1, 1], [], []>} : vector<8x512xf32>, vector<512x128xf32>, vector<8x128xf32> -> vector<8x128xf32>
    %c0_15 = arith.constant 0 : index
    %c0_16 = arith.constant 0 : index
    %19 = vector.load %arg7[%c0_15, %c0_16] : memref<1x128xf32, #tpu.memory_space<vmem>>, vector<1x128xf32>
    %20 = vector.broadcast %19 : vector<1x128xf32> to vector<8x128xf32>
    %21 = arith.addf %18, %20 : vector<8x128xf32>
    %c0_17 = arith.constant 0 : index
    %c0_18 = arith.constant 0 : index
    %22 = vector.load %arg8[%c0_17, %c0_18] : memref<8x128xf32, #tpu.memory_space<vmem>>, vector<8x128xf32>
    tpu.vector_store %arg8[%c0_17, %c0_18], %21 {strides = array<i32>} : memref<8x128xf32, #tpu.memory_space<vmem>>, vector<8x128xf32>,
    return
  }
  func.func @transform_0(%arg0: i32) -> (i32, i32) {
    %c0_i32 = arith.constant 0 : i32
    %c0_i32_0 = arith.constant 0 : i32
    return %arg0, %c0_i32 : i32, i32
  }
  func.func @transform_1(%arg0: i32) -> (i32, i32) {
    %c0_i32 = arith.constant 0 : i32
    %c0_i32_0 = arith.constant 0 : i32
    %c0_i32_1 = arith.constant 0 : i32
    return %c0_i32, %c0_i32_0 : i32, i32
  }
  func.func @transform_2(%arg0: i32) -> (i32, i32) {
    %c0_i32 = arith.constant 0 : i32
    %c0_i32_0 = arith.constant 0 : i32
    %c0_i32_1 = arith.constant 0 : i32
    return %c0_i32, %c0_i32_0 : i32, i32
  }
  func.func @transform_3(%arg0: i32) -> (i32, i32) {
    %c0_i32 = arith.constant 0 : i32
    %c0_i32_0 = arith.constant 0 : i32
    %c0_i32_1 = arith.constant 0 : i32
    return %c0_i32, %c0_i32_0 : i32, i32
  }
  func.func @transform_4(%arg0: i32) -> (i32, i32) {
    %c0_i32 = arith.constant 0 : i32
    %c0_i32_0 = arith.constant 0 : i32
    %c0_i32_1 = arith.constant 0 : i32
    return %c0_i32, %c0_i32_0 : i32, i32
  }
  func.func @transform_5(%arg0: i32) -> (i32, i32) {
    %c0_i32 = arith.constant 0 : i32
    %c0_i32_0 = arith.constant 0 : i32
    %c0_i32_1 = arith.constant 0 : i32
    return %c0_i32, %c0_i32_0 : i32, i32
  }
  func.func @transform_6(%arg0: i32) -> (i32, i32) {
    %c0_i32 = arith.constant 0 : i32
    %c0_i32_0 = arith.constant 0 : i32
    %c0_i32_1 = arith.constant 0 : i32
    return %c0_i32, %c0_i32_0 : i32, i32
  }
  func.func @transform_7(%arg0: i32) -> (i32, i32) {
    %c0_i32 = arith.constant 0 : i32
    %c0_i32_0 = arith.constant 0 : i32
    return %arg0, %c0_i32 : i32, i32
  }
}

</mosaic_0001>

<bundles_post_ra>
// kernel: imitation_net_forward.1
= control target key start
LH: loop header
LB: loop body
LE: loop exit
PB: predicated region body
PF: predicated region fallthrough
CT: control target
= control target key end

     0   :  { %12 = vsyncpa [#allocation3], 0  ;;  %s2067_s0 = inlined_call_operand.hbm [shape: f32[8,32], index: 0, kind: input, shape index: {}]   ;;  %s2068_s1 = inlined_call_operand.hbm [shape: bf16[32,512], index: 1, kind: input, shape index: {}]   ;;  %s2069_s2 = inlined_call_operand.hbm [shape: f32[1,512], index: 2, kind: input, shape index: {}]   ;;  %s2070_s3 = inlined_call_operand.hbm [shape: bf16[512,512], index: 3, kind: input, shape index: {}]   ;;  %s2071_s4 = inlined_call_operand.vmem [shape: f32[1,512], index: 4, kind: input, shape index: {}]   ;;  %s2072_s5 = inlined_call_operand.hbm [shape: f32[512,128], index: 5, kind: input, shape index: {}]   ;;  %s2073_s6 = inlined_call_operand.vmem [shape: f32[1,128], index: 6, kind: input, shape index: {}]   ;;  %s2074_s7 = inlined_call_operand.vmem [shape: f32[8,128], index: 7, kind: output, shape index: {}]  }
   0x1   :  { %13 = vsyncpa [#allocation5], 0 }
   0x2   :  { %14 = vsyncpa [#allocation8], 0  ;;  %s1963_s24 = smov [#allocation4]  }
   0x3   :  { %s30_s25 = sshll.u32 %s1963_s24, 4  ;;  %s31_s25 = int_to_ptr.vmem [resolvable:$true] %s30_s25 }
   0x4   :  { %s1865_s26 = scalar_lea.vmem %s31_s25, 1024  ;;  %p1870_p1 = scmp.lt.s32.totalorder %s31_s25, %s31_s25 }
   0x5   :  { %p1866_p0 = scmp.ne.s32.totalorder %s31_s25, %s1865_s26  ;;  %p1871_p2 = scmp.lt.s32.totalorder %s1865_s26, %s1865_s26 }
   0x7   :  { %p1872_p3 = por %p1871_p2, %p1870_p1 }
   0x9   :  { %p1873_p4 = pnand %p1872_p3, %p1866_p0 }
   0xb   :  { %1876 = shalt.err (!%p1873_p4)
}
   0xc   :  { %s1964_s27 = smov 256   ;;  %s1965_s28 = smov 16  }
   0xd   :  { %36 = dma.hbm_to_vmem [thread:$0]  %s2068_s1, 1024, %s31_s25, [#allocation5], %s1964_s27, %s1964_s27, %s1965_s28  }
   0xe   :  { %s1966_s8 = smov [#allocation7]   ;;  %s1967_s10 = smov [#allocation2]  }
   0xf   :  { %s52_s9 = sshll.u32 %s1966_s8, 4  ;;  %s21_s11 = sshll.u32 %s1967_s10, 4  ;;  %s53_s9 = int_to_ptr.vmem [resolvable:$true] %s52_s9  ;;  %s22_s11 = int_to_ptr.vmem [resolvable:$true] %s21_s11 }
  0x10   :  { %s1885_s12 = scalar_lea.vmem %s53_s9, 16384  ;;  %p1890_p6 = scmp.lt.s32.totalorder %s53_s9, %s53_s9 }
  0x11   :  { %p1886_p5 = scmp.ne.s32.totalorder %s53_s9, %s1885_s12  ;;  %p1891_p7 = scmp.lt.s32.totalorder %s1885_s12, %s1885_s12 }
  0x13   :  { %p1892_p8 = por %p1891_p7, %p1890_p6 }
  0x15   :  { %p1893_p9 = pnand %p1892_p8, %p1886_p5 }
  0x17   :  { %1896 = shalt.err (!%p1893_p9)
}
  0x18   :  { %58 = dma.hbm_to_vmem [thread:$0]  %s2070_s3, 16384, %s53_s9, [#allocation8], %s1964_s27, %s1964_s27, %s1965_s28  }
  0x19   :  { %s1905_s15 = scalar_lea.vmem %s22_s11, 128  ;;  %p1910_p11 = scmp.lt.s32.totalorder %s22_s11, %s22_s11 }
  0x1a   :  { %p1906_p10 = scmp.ne.s32.totalorder %s22_s11, %s1905_s15  ;;  %p1911_p12 = scmp.lt.s32.totalorder %s1905_s15, %s1905_s15 }
  0x1c   :  { %p1912_p13 = por %p1911_p12, %p1910_p11 }
  0x1e   :  { %p1913_p0 = pnand %p1912_p13, %p1906_p10 }
  0x20   :  { %1916 = shalt.err (!%p1913_p0)
}
  0x21   :  { %24 = dma.hbm_to_vmem [thread:$0]  %s2067_s0, 128, %s22_s11, [#allocation3]  }
  0x22   :  { %s1968_s17 = smov [#allocation6]   ;;  %s1969_s19 = smov [#allocation9]  }
  0x23   :  { %s43_s18 = sshll.u32 %s1968_s17, 4  ;;  %s66_s20 = sshll.u32 %s1969_s19, 4  ;;  %s44_s18 = int_to_ptr.vmem [resolvable:$true] %s43_s18  ;;  %s67_s20 = int_to_ptr.vmem [resolvable:$true] %s66_s20 }
  0x24   :  { %s1925_s21 = scalar_lea.vmem %s44_s18, 64  ;;  %p1930_p2 = scmp.lt.s32.totalorder %s44_s18, %s44_s18 }
  0x25   :  { %p1926_p1 = scmp.ne.s32.totalorder %s44_s18, %s1925_s21  ;;  %p1931_p3 = scmp.lt.s32.totalorder %s1925_s21, %s1925_s21 }
  0x27   :  { %p1932_p4 = por %p1931_p3, %p1930_p2 }
  0x29   :  { %p1933_p5 = pnand %p1932_p4, %p1926_p1 }
  0x2b   :  { %1936 = shalt.err (!%p1933_p5)
}
  0x2c   :  { %46 = dma.hbm_to_vmem [thread:$0]  %s2069_s2, 64, %s44_s18, [#allocation5]  }
  0x2d   :  { %s1945_s23 = scalar_lea.vmem %s67_s20, 8192  ;;  %p1950_p7 = scmp.lt.s32.totalorder %s67_s20, %s67_s20 }
  0x2e   :  { %p1946_p6 = scmp.ne.s32.totalorder %s67_s20, %s1945_s23  ;;  %p1951_p8 = scmp.lt.s32.totalorder %s1945_s23, %s1945_s23 }
  0x30   :  { %p1952_p9 = por %p1951_p8, %p1950_p7 }
  0x32   :  { %p1953_p10 = pnand %p1952_p9, %p1946_p6 }
  0x34   :  { %1956 = shalt.err (!%p1953_p10)
}
  0x35   :  { %s1970_s0 = smov 128   ;;  %s1971_s24 = smov 8  }
  0x36   :  { %72 = dma.hbm_to_vmem [thread:$0]  %s2072_s5, 8192, %s67_s20, [#allocation8], %s1970_s0, %s1970_s0, %s1971_s24  }
  0x37   :  { %1957 = dma.done.wait [#allocation3], 128  }
  0x38   :  { %1958 = vsyncadd [#allocation3], 4294967168 }
  0x39   :  { %1959 = dma.done.wait [#allocation5], 1088  }
  0x3a   :  { %1960 = vsyncadd [#allocation5], 4294966208 }
  0x3b   :  { %1961 = dma.done.wait [#allocation8], 24576  }
  0x3c   :  { %1962 = vsyncadd [#allocation8], 4294942720  ;;  %v1972_v0 = vmov 0   ;;  %v1653_v1 = vld [vmem:[#allocation4 + $0x24] ss:$16 sps:$4 sm:$0xff]   ;;  %v91_v9 = vld [vmem:[#allocation2] sm:$0xff] }
  0x3d   :  { %199 = vmatprep.mubr.bf16.mxu0 %v1972_v0  ;;  %240 = vmatprep.mubr.bf16.mxu1 %v1972_v0  ;;  %v1655_v2 = vld [vmem:[#allocation4 + $0x2c] ss:$16 sps:$4 sm:$0xff]   ;;  %v1657_v3 = vld [vmem:[#allocation4 + $0x20] ss:$16 sps:$4 sm:$0xff]   ;;  %v1658_v4 = vld [vmem:[#allocation4 + $0x28] ss:$16 sps:$4 sm:$0xff]   ;;  %v92_v12 = vpack.c.bf16 %v91_v9, %v91_v9 }
  0x3e   :  { %179 = vmatprep.subr.bf16.mxu0 %v1653_v1  ;;  %220 = vmatprep.subr.bf16.mxu1 %v1655_v2  ;;  %v1659_v5 = vld [vmem:[#allocation4 + $0x4] ss:$16 sps:$4 sm:$0xff]   ;;  %v1661_v6 = vld [vmem:[#allocation4 + $0xc] ss:$16 sps:$4 sm:$0xff]   ;;  %v1663_v7 = vld [vmem:[#allocation4] ss:$16 sps:$4 sm:$0xff]  }
  0x3f   :  { %180 = vmatpush1.bf16.msra.mxu0 %v1657_v3  ;;  %221 = vmatpush1.bf16.msra.mxu1 %v1658_v4  ;;  %v1664_v8 = vld [vmem:[#allocation4 + $0x8] ss:$16 sps:$4 sm:$0xff]   ;;  %v1665_v10 = vld [vmem:[#allocation7 + $0xe0] ss:$16 sps:$4 sm:$0xff]   ;;  %vm163_vm0 = vcmask 261120  }
  0x40   :  { %181 = vmatprep.subr.bf16.mxu0 %v1659_v5  ;;  %222 = vmatprep.subr.bf16.mxu1 %v1661_v6  ;;  %v1667_v11 = vld [vmem:[#allocation7 + $0xe4] ss:$16 sps:$4 sm:$0xff]   ;;  %v1668_v13 = vld [vmem:[#allocation7 + $0x2e0] ss:$16 sps:$4 sm:$0xff]  }
  0x41   :  { %v1670_v14 = vld [vmem:[#allocation7 + $0x2e4] ss:$16 sps:$4 sm:$0xff]   ;;  %v1671_v17 = vld [vmem:[#allocation7 + $0xc0] ss:$16 sps:$4 sm:$0xff]  }
  0x42   :  { %v1673_v15 = vld [vmem:[#allocation7 + $0xc4] ss:$16 sps:$4 sm:$0xff]   ;;  %v1674_v18 = vld [vmem:[#allocation7 + $0x2c0] ss:$16 sps:$4 sm:$0xff]  }
  0x43   :  { %182 = vmatpush1.bf16.msra.mxu0 %v1663_v7  ;;  %223 = vmatpush1.bf16.msra.mxu1 %v1664_v8  ;;  %v1676_v16 = vld [vmem:[#allocation7 + $0x2c4] ss:$16 sps:$4 sm:$0xff]   ;;  %v1677_v21 = vld [vmem:[#allocation7 + $0xa0] ss:$16 sps:$4 sm:$0xff]  }
  0x44   :  { %1047 = vmatprep.subr.bf16.mxu0 %v1667_v11  ;;  %1088 = vmatprep.subr.bf16.mxu1 %v1670_v14  ;;  %v1679_v19 = vld [vmem:[#allocation7 + $0xa4] ss:$16 sps:$4 sm:$0xff]   ;;  %v1680_v22 = vld [vmem:[#allocation7 + $0x2a0] ss:$16 sps:$4 sm:$0xff]   ;;  %v1763_v11 = vld [vmem:[#allocation7 + $0xec] ss:$16 sps:$4 sm:$0xff]  }
  0x45   :  { %v1682_v20 = vld [vmem:[#allocation7 + $0x2a4] ss:$16 sps:$4 sm:$0xff]   ;;  %v1683_v25 = vld [vmem:[#allocation7 + $0x80] ss:$16 sps:$4 sm:$0xff]  }
  0x46   :  { %1442 = vmatmul.mubr.msk.bf16.vlgmr.msra.gmra.mxu0 %vm163_vm0, %v92_v12  ;;  %1443 = vmatmul.mubr.msk.bf16.vlgmr.msra.gmra.mxu1 %vm163_vm0, %v92_v12  ;;  %v1685_v23 = vld [vmem:[#allocation7 + $0x84] ss:$16 sps:$4 sm:$0xff]   ;;  %v1686_v26 = vld [vmem:[#allocation7 + $0x280] ss:$16 sps:$4 sm:$0xff]   ;;  %v1766_v12 = vld [vmem:[#allocation7 + $0x2ec] ss:$16 sps:$4 sm:$0xff]  }
  0x47   :  { %1048 = vmatpush1.bf16.msra.mxu0 %v1665_v10  ;;  %1089 = vmatpush1.bf16.msra.mxu1 %v1668_v13  ;;  %v1688_v24 = vld [vmem:[#allocation7 + $0x284] ss:$16 sps:$4 sm:$0xff]   ;;  %v1689_v29 = vld [vmem:[#allocation7 + $0x60] ss:$16 sps:$4 sm:$0xff]   ;;  %v103_v13 = vlaneseq }
  0x48   :  { %1049 = vmatprep.subr.bf16.mxu0 %v1673_v15  ;;  %1090 = vmatprep.subr.bf16.mxu1 %v1676_v16  ;;  %v1691_v27 = vld [vmem:[#allocation7 + $0x64] ss:$16 sps:$4 sm:$0xff]   ;;  %v1692_v30 = vld [vmem:[#allocation7 + $0x260] ss:$16 sps:$4 sm:$0xff]  }
  0x49   :  { %v1694_v28 = vld [vmem:[#allocation7 + $0x264] ss:$16 sps:$4 sm:$0xff]   ;;  %v1695_v33 = vld [vmem:[#allocation7 + $0x40] ss:$16 sps:$4 sm:$0xff]   ;;  %v2028_v14 = vshrl.u32 %v103_v13, 7 }
  0x4a   :  { %v1697_v31 = vld [vmem:[#allocation7 + $0x44] ss:$16 sps:$4 sm:$0xff]   ;;  %v1698_v34 = vld [vmem:[#allocation7 + $0x240] ss:$16 sps:$4 sm:$0xff]   ;;  %v1812_v13 = vld [vmem:[#allocation7 + $0x3e8] ss:$16 sps:$4 sm:$0xff]  }
  0x4b   :  { %1050 = vmatpush1.bf16.msra.mxu0 %v1671_v17  ;;  %1091 = vmatpush1.bf16.msra.mxu1 %v1674_v18  ;;  %v1700_v32 = vld [vmem:[#allocation7 + $0x244] ss:$16 sps:$4 sm:$0xff]   ;;  %v1701_v37 = vld [vmem:[#allocation7 + $0x20] ss:$16 sps:$4 sm:$0xff]   ;;  %v105_v15 = vsub.s32 0, %v2028_v14  ;;  %v113_v16 = vsub.s32 2, %v2028_v14 }
  0x4c   :  { %1051 = vmatprep.subr.bf16.mxu0 %v1679_v19  ;;  %1092 = vmatprep.subr.bf16.mxu1 %v1682_v20  ;;  %v1703_v35 = vld [vmem:[#allocation7 + $0x24] ss:$16 sps:$4 sm:$0xff]   ;;  %v1704_v38 = vld [vmem:[#allocation7 + $0x220] ss:$16 sps:$4 sm:$0xff]   ;;  %v101_v17 = vld [vmem:[#allocation6] sm:$0xf] }
  0x4d   :  { %v1706_v36 = vld [vmem:[#allocation7 + $0x224] ss:$16 sps:$4 sm:$0xff]   ;;  %v1707_v41 = vld [vmem:[#allocation7] ss:$16 sps:$4 sm:$0xff]   ;;  %v109_v18 = vsub.s32 1, %v2028_v14  ;;  %v117_v19 = vsub.s32 3, %v2028_v14  ;;  %v106_v20 = vrot.slane %v101_v17, %v105_v15 }
  0x4e   :  { %v1709_v39 = vld [vmem:[#allocation7 + $0x4] ss:$16 sps:$4 sm:$0xff]   ;;  %v1710_v42 = vld [vmem:[#allocation7 + $0x200] ss:$16 sps:$4 sm:$0xff]  }
  0x4f   :  { %1052 = vmatpush1.bf16.msra.mxu0 %v1677_v21  ;;  %1093 = vmatpush1.bf16.msra.mxu1 %v1680_v22  ;;  %v1712_v40 = vld [vmem:[#allocation7 + $0x204] ss:$16 sps:$4 sm:$0xff]   ;;  %v1713_v45 = vld [vmem:[#allocation7 + $0x1e0] ss:$16 sps:$4 sm:$0xff]   ;;  %v114_v21 = vrot.slane %v101_v17, %v113_v16  ;;  %v110_v22 = vrot.slane %v101_v17, %v109_v18 }
  0x50   :  { %1053 = vmatprep.subr.bf16.mxu0 %v1685_v23  ;;  %1094 = vmatprep.subr.bf16.mxu1 %v1688_v24  ;;  %v1715_v43 = vld [vmem:[#allocation7 + $0x1e4] ss:$16 sps:$4 sm:$0xff]   ;;  %v1716_v46 = vld [vmem:[#allocation7 + $0x3e0] ss:$16 sps:$4 sm:$0xff]   ;;  %v118_v23 = vrot.slane %v101_v17, %v117_v19  ;;  %v1817_v17 = vld [vmem:[#allocation7 + $0x1cc] ss:$16 sps:$4 sm:$0xff]  }
  0x51   :  { %v1718_v44 = vld [vmem:[#allocation7 + $0x3e4] ss:$16 sps:$4 sm:$0xff]   ;;  %v1719_v49 = vld [vmem:[#allocation7 + $0x1c0] ss:$16 sps:$4 sm:$0xff]  }
  0x52   :  { %v1721_v47 = vld [vmem:[#allocation7 + $0x1c4] ss:$16 sps:$4 sm:$0xff]   ;;  %v1722_v50 = vld [vmem:[#allocation7 + $0x3c0] ss:$16 sps:$4 sm:$0xff]  }
  0x53   :  { %1054 = vmatpush1.bf16.msra.mxu0 %v1683_v25  ;;  %1095 = vmatpush1.bf16.msra.mxu1 %v1686_v26  ;;  %v1724_v48 = vld [vmem:[#allocation7 + $0x3c4] ss:$16 sps:$4 sm:$0xff]   ;;  %v1725_v53 = vld [vmem:[#allocation7 + $0x1a0] ss:$16 sps:$4 sm:$0xff]  }
  0x54   :  { %1055 = vmatprep.subr.bf16.mxu0 %v1691_v27  ;;  %1096 = vmatprep.subr.bf16.mxu1 %v1694_v28  ;;  %v1727_v51 = vld [vmem:[#allocation7 + $0x1a4] ss:$16 sps:$4 sm:$0xff]   ;;  %v1728_v54 = vld [vmem:[#allocation7 + $0x3a0] ss:$16 sps:$4 sm:$0xff]  }
  0x55   :  { %v1730_v52 = vld [vmem:[#allocation7 + $0x3a4] ss:$16 sps:$4 sm:$0xff]   ;;  %v1731_v57 = vld [vmem:[#allocation7 + $0x180] ss:$16 sps:$4 sm:$0xff]  }
  0x56   :  { %v1733_v55 = vld [vmem:[#allocation7 + $0x184] ss:$16 sps:$4 sm:$0xff]   ;;  %v1734_v58 = vld [vmem:[#allocation7 + $0x380] ss:$16 sps:$4 sm:$0xff]  }
  0x57   :  { %1056 = vmatpush1.bf16.msra.mxu0 %v1689_v29  ;;  %1097 = vmatpush1.bf16.msra.mxu1 %v1692_v30  ;;  %v1736_v56 = vld [vmem:[#allocation7 + $0x384] ss:$16 sps:$4 sm:$0xff]   ;;  %v1737_v61 = vld [vmem:[#allocation7 + $0x160] ss:$16 sps:$4 sm:$0xff]  }
  0x58   :  { %1057 = vmatprep.subr.bf16.mxu0 %v1697_v31  ;;  %1098 = vmatprep.subr.bf16.mxu1 %v1700_v32  ;;  %v1739_v59 = vld [vmem:[#allocation7 + $0x164] ss:$16 sps:$4 sm:$0xff]   ;;  %v1740_v62 = vld [vmem:[#allocation7 + $0x360] ss:$16 sps:$4 sm:$0xff]  }
  0x59   :  { %v1742_v60 = vld [vmem:[#allocation7 + $0x364] ss:$16 sps:$4 sm:$0xff]   ;;  %v1743_v1 = vld [vmem:[#allocation7 + $0x140] ss:$16 sps:$4 sm:$0xff]  }
  0x5a   :  { %v1745_v63 = vld [vmem:[#allocation7 + $0x144] ss:$16 sps:$4 sm:$0xff]   ;;  %v1746_v2 = vld [vmem:[#allocation7 + $0x340] ss:$16 sps:$4 sm:$0xff]  }
  0x5b   :  { %1058 = vmatpush1.bf16.msra.mxu0 %v1695_v33  ;;  %1099 = vmatpush1.bf16.msra.mxu1 %v1698_v34  ;;  %v1748_v0 = vld [vmem:[#allocation7 + $0x344] ss:$16 sps:$4 sm:$0xff]   ;;  %v1749_v5 = vld [vmem:[#allocation7 + $0x120] ss:$16 sps:$4 sm:$0xff]  }
  0x5c   :  { %1059 = vmatprep.subr.bf16.mxu0 %v1703_v35  ;;  %1100 = vmatprep.subr.bf16.mxu1 %v1706_v36  ;;  %v1751_v3 = vld [vmem:[#allocation7 + $0x124] ss:$16 sps:$4 sm:$0xff]   ;;  %v1752_v6 = vld [vmem:[#allocation7 + $0x320] ss:$16 sps:$4 sm:$0xff]  }
  0x5d   :  { %v1754_v4 = vld [vmem:[#allocation7 + $0x324] ss:$16 sps:$4 sm:$0xff]   ;;  %v1755_v9 = vld [vmem:[#allocation7 + $0x100] ss:$16 sps:$4 sm:$0xff]  }
  0x5e   :  { %v1757_v7 = vld [vmem:[#allocation7 + $0x104] ss:$16 sps:$4 sm:$0xff]   ;;  %v1758_v10 = vld [vmem:[#allocation7 + $0x300] ss:$16 sps:$4 sm:$0xff]  }
  0x5f   :  { %1060 = vmatpush1.bf16.msra.mxu0 %v1701_v37  ;;  %1101 = vmatpush1.bf16.msra.mxu1 %v1704_v38  ;;  %v1760_v8 = vld [vmem:[#allocation7 + $0x304] ss:$16 sps:$4 sm:$0xff]  }
  0x60   :  { %1061 = vmatprep.subr.bf16.mxu0 %v1709_v39  ;;  %1102 = vmatprep.subr.bf16.mxu1 %v1712_v40 }
  0x63   :  { %1062 = vmatpush1.bf16.msra.mxu0 %v1707_v41  ;;  %1103 = vmatpush1.bf16.msra.mxu1 %v1710_v42 }
  0x64   :  { %1063 = vmatprep.subr.bf16.mxu0 %v1715_v43  ;;  %1104 = vmatprep.subr.bf16.mxu1 %v1718_v44  ;;  %v1761_v43 = vld [vmem:[#allocation7 + $0xe8] ss:$16 sps:$4 sm:$0xff]  }
  0x65   :  { %v1764_v44 = vld [vmem:[#allocation7 + $0x2e8] ss:$16 sps:$4 sm:$0xff]  }
  0x67   :  { %1064 = vmatpush2.bf16.msra.mxu0 %v1713_v45  ;;  %1105 = vmatpush2.bf16.msra.mxu1 %v1716_v46  ;;  %v1769_v46 = vld [vmem:[#allocation7 + $0xcc] ss:$16 sps:$4 sm:$0xff]  }
  0x68   :  { %1065 = vmatprep.subr.bf16.mxu0 %v1721_v47  ;;  %1106 = vmatprep.subr.bf16.mxu1 %v1724_v48  ;;  %v1772_v47 = vld [vmem:[#allocation7 + $0x2cc] ss:$16 sps:$4 sm:$0xff]   ;;  %v1767_v48 = vld [vmem:[#allocation7 + $0xc8] ss:$16 sps:$4 sm:$0xff]  }
  0x6b   :  { %1066 = vmatpush2.bf16.msra.mxu0 %v1719_v49  ;;  %1107 = vmatpush2.bf16.msra.mxu1 %v1722_v50  ;;  %v1770_v49 = vld [vmem:[#allocation7 + $0x2c8] ss:$16 sps:$4 sm:$0xff]   ;;  %v1775_v50 = vld [vmem:[#allocation7 + $0xac] ss:$16 sps:$4 sm:$0xff]  }
  0x6c   :  { %1067 = vmatprep.subr.bf16.mxu0 %v1727_v51  ;;  %1108 = vmatprep.subr.bf16.mxu1 %v1730_v52  ;;  %v1778_v51 = vld [vmem:[#allocation7 + $0x2ac] ss:$16 sps:$4 sm:$0xff]   ;;  %v1773_v52 = vld [vmem:[#allocation7 + $0xa8] ss:$16 sps:$4 sm:$0xff]  }
  0x6f   :  { %1068 = vmatpush2.bf16.msra.mxu0 %v1725_v53  ;;  %1109 = vmatpush2.bf16.msra.mxu1 %v1728_v54  ;;  %v1776_v53 = vld [vmem:[#allocation7 + $0x2a8] ss:$16 sps:$4 sm:$0xff]   ;;  %v1781_v54 = vld [vmem:[#allocation7 + $0x8c] ss:$16 sps:$4 sm:$0xff]  }
  0x70   :  { %1069 = vmatprep.subr.bf16.mxu0 %v1733_v55  ;;  %1110 = vmatprep.subr.bf16.mxu1 %v1736_v56  ;;  %v1784_v55 = vld [vmem:[#allocation7 + $0x28c] ss:$16 sps:$4 sm:$0xff]   ;;  %v1779_v56 = vld [vmem:[#allocation7 + $0x88] ss:$16 sps:$4 sm:$0xff]  }
  0x73   :  { %1070 = vmatpush2.bf16.msra.mxu0 %v1731_v57  ;;  %1111 = vmatpush2.bf16.msra.mxu1 %v1734_v58  ;;  %v1782_v57 = vld [vmem:[#allocation7 + $0x288] ss:$16 sps:$4 sm:$0xff]   ;;  %v1787_v58 = vld [vmem:[#allocation7 + $0x6c] ss:$16 sps:$4 sm:$0xff]  }
  0x74   :  { %1071 = vmatprep.subr.bf16.mxu0 %v1739_v59  ;;  %1112 = vmatprep.subr.bf16.mxu1 %v1742_v60  ;;  %v1790_v59 = vld [vmem:[#allocation7 + $0x26c] ss:$16 sps:$4 sm:$0xff]   ;;  %v1785_v60 = vld [vmem:[#allocation7 + $0x68] ss:$16 sps:$4 sm:$0xff]  }
  0x77   :  { %1072 = vmatpush2.bf16.msra.mxu0 %v1737_v61  ;;  %1113 = vmatpush2.bf16.msra.mxu1 %v1740_v62  ;;  %v1788_v61 = vld [vmem:[#allocation7 + $0x268] ss:$16 sps:$4 sm:$0xff]   ;;  %v1793_v62 = vld [vmem:[#allocation7 + $0x4c] ss:$16 sps:$4 sm:$0xff]  }
  0x78   :  { %1073 = vmatprep.subr.bf16.mxu0 %v1745_v63  ;;  %1114 = vmatprep.subr.bf16.mxu1 %v1748_v0  ;;  %v1796_v63 = vld [vmem:[#allocation7 + $0x24c] ss:$16 sps:$4 sm:$0xff]   ;;  %v1791_v0 = vld [vmem:[#allocation7 + $0x48] ss:$16 sps:$4 sm:$0xff]  }
  0x7b   :  { %1074 = vmatpush2.bf16.msra.mxu0 %v1743_v1  ;;  %1115 = vmatpush2.bf16.msra.mxu1 %v1746_v2  ;;  %v1794_v1 = vld [vmem:[#allocation7 + $0x248] ss:$16 sps:$4 sm:$0xff]   ;;  %v1799_v2 = vld [vmem:[#allocation7 + $0x2c] ss:$16 sps:$4 sm:$0xff]  }
  0x7c   :  { %1075 = vmatprep.subr.bf16.mxu0 %v1751_v3  ;;  %1116 = vmatprep.subr.bf16.mxu1 %v1754_v4  ;;  %v1802_v3 = vld [vmem:[#allocation7 + $0x22c] ss:$16 sps:$4 sm:$0xff]   ;;  %v1797_v4 = vld [vmem:[#allocation7 + $0x28] ss:$16 sps:$4 sm:$0xff]  }
  0x7f   :  { %1076 = vmatpush2.bf16.msra.mxu0 %v1749_v5  ;;  %1117 = vmatpush2.bf16.msra.mxu1 %v1752_v6  ;;  %v1800_v5 = vld [vmem:[#allocation7 + $0x228] ss:$16 sps:$4 sm:$0xff]   ;;  %v1805_v6 = vld [vmem:[#allocation7 + $0xc] ss:$16 sps:$4 sm:$0xff]  }
  0x80   :  { %1077 = vmatprep.subr.bf16.mxu0 %v1757_v7  ;;  %1118 = vmatprep.subr.bf16.mxu1 %v1760_v8  ;;  %v1808_v7 = vld [vmem:[#allocation7 + $0x20c] ss:$16 sps:$4 sm:$0xff]   ;;  %v1803_v8 = vld [vmem:[#allocation7 + $0x8] ss:$16 sps:$4 sm:$0xff]  }
  0x83   :  { %1078 = vmatpush2.bf16.msra.mxu0 %v1755_v9  ;;  %1119 = vmatpush2.bf16.msra.mxu1 %v1758_v10  ;;  %v1806_v9 = vld [vmem:[#allocation7 + $0x208] ss:$16 sps:$4 sm:$0xff]   ;;  %v1811_v10 = vld [vmem:[#allocation7 + $0x1ec] ss:$16 sps:$4 sm:$0xff]  }
  0x84   :  { %1129 = vmatprep.subr.bf16.mxu0 %v1763_v11  ;;  %1170 = vmatprep.subr.bf16.mxu1 %v1766_v12  ;;  %v1814_v11 = vld [vmem:[#allocation7 + $0x3ec] ss:$16 sps:$4 sm:$0xff]   ;;  %v1809_v12 = vld [vmem:[#allocation7 + $0x1e8] ss:$16 sps:$4 sm:$0xff]  }
 0x106   :  { %v201_v24 = vpop.f32.mrf.mxu0  ;;  %v242_v25 = vpop.f32.mrf.mxu1 }
 0x107   :  { %v202_v26 = vadd.f32 %v201_v24, %v106_v20  ;;  %v243_v27 = vadd.f32 %v242_v25, %v114_v21  ;;  %v1820_v20 = vld [vmem:[#allocation7 + $0x3cc] ss:$16 sps:$4 sm:$0xff]   ;;  %v1815_v21 = vld [vmem:[#allocation7 + $0x1c8] ss:$16 sps:$4 sm:$0xff]  }
 0x108   :  { %v203_v28 = vpop.f32.mrf.mxu0  ;;  %v244_v29 = vpop.f32.mrf.mxu1  ;;  %v1826_v24 = vld [vmem:[#allocation7 + $0x3ac] ss:$16 sps:$4 sm:$0xff]   ;;  %v1821_v25 = vld [vmem:[#allocation7 + $0x1a8] ss:$16 sps:$4 sm:$0xff]  }
 0x109   :  { %v251_v30 = vmax.f32 %v243_v27, 0.0  ;;  %v204_v31 = vadd.f32 %v203_v28, %v110_v22  ;;  %v245_v32 = vadd.f32 %v244_v29, %v118_v23  ;;  %v249_v33 = vmax.f32 %v202_v26, 0.0  ;;  %v1818_v22 = vld [vmem:[#allocation7 + $0x3c8] ss:$16 sps:$4 sm:$0xff]   ;;  %v1823_v23 = vld [vmem:[#allocation7 + $0x1ac] ss:$16 sps:$4 sm:$0xff]  }
 0x10a   :  { %v205_v34 = vpop.f32.mrf.mxu0  ;;  %v246_v35 = vpop.f32.mrf.mxu1  ;;  %v1824_v26 = vld [vmem:[#allocation7 + $0x3a8] ss:$16 sps:$4 sm:$0xff]   ;;  %v1829_v27 = vld [vmem:[#allocation7 + $0x18c] ss:$16 sps:$4 sm:$0xff]  }
 0x10b   :  { %v250_v36 = vmax.f32 %v204_v31, 0.0  ;;  %v252_v37 = vmax.f32 %v245_v32, 0.0  ;;  %v2042_v38 = vpack.c.bf16 %v251_v30, %v251_v30  ;;  %v2044_v45 = vpack.c.bf16 %v249_v33, %v249_v33  ;;  %v1832_v28 = vld [vmem:[#allocation7 + $0x38c] ss:$16 sps:$4 sm:$0xff]   ;;  %v1827_v29 = vld [vmem:[#allocation7 + $0x188] ss:$16 sps:$4 sm:$0xff]  }
 0x10c   :  { %v206_v39 = vpop.f32.mrf.mxu0  ;;  %v247_v40 = vpop.f32.mrf.mxu1  ;;  %v1830_v30 = vld [vmem:[#allocation7 + $0x388] ss:$16 sps:$4 sm:$0xff]   ;;  %v1835_v31 = vld [vmem:[#allocation7 + $0x16c] ss:$16 sps:$4 sm:$0xff]  }
 0x10d   :  { %v254_v41 = vpack.c.bf16 %v250_v36, %v250_v36  ;;  %v256_v42 = vpack.c.bf16 %v252_v37, %v252_v37  ;;  %v1838_v32 = vld [vmem:[#allocation7 + $0x36c] ss:$16 sps:$4 sm:$0xff]   ;;  %v1833_v33 = vld [vmem:[#allocation7 + $0x168] ss:$16 sps:$4 sm:$0xff]  }
 0x10e   :  { %v1836_v34 = vld [vmem:[#allocation7 + $0x368] ss:$16 sps:$4 sm:$0xff]   ;;  %v1841_v35 = vld [vmem:[#allocation7 + $0x14c] ss:$16 sps:$4 sm:$0xff]  }
 0x10f   :  { %1079 = vmatprep.mubr.bf16.mxu0 %v254_v41  ;;  %1120 = vmatprep.mubr.bf16.mxu1 %v256_v42  ;;  %v1844_v36 = vld [vmem:[#allocation7 + $0x34c] ss:$16 sps:$4 sm:$0xff]   ;;  %v1839_v37 = vld [vmem:[#allocation7 + $0x148] ss:$16 sps:$4 sm:$0xff]  }
 0x110   :  { %1080 = vmatmul.mubr.bf16.vlgmr.msra.gmra.mxu0 %v2044_v45  ;;  %1121 = vmatmul.mubr.bf16.vlgmr.msra.gmra.mxu1 %v2042_v38  ;;  %v1842_v39 = vld [vmem:[#allocation7 + $0x348] ss:$16 sps:$4 sm:$0xff]   ;;  %v1847_v40 = vld [vmem:[#allocation7 + $0x12c] ss:$16 sps:$4 sm:$0xff]  }
 0x111   :  { %1130 = vmatpush1.bf16.msra.mxu0 %v1761_v43  ;;  %1171 = vmatpush1.bf16.msra.mxu1 %v1764_v44  ;;  %v1848_v43 = vld [vmem:[#allocation7 + $0x328] ss:$16 sps:$4 sm:$0xff]   ;;  %v1853_v44 = vld [vmem:[#allocation7 + $0x10c] ss:$16 sps:$4 sm:$0xff]  }
 0x112   :  { %1161 = vmatprep.mubr.bf16.mxu0 %v254_v41  ;;  %1202 = vmatprep.mubr.bf16.mxu1 %v256_v42  ;;  %v1850_v41 = vld [vmem:[#allocation7 + $0x32c] ss:$16 sps:$4 sm:$0xff]   ;;  %v1845_v42 = vld [vmem:[#allocation7 + $0x128] ss:$16 sps:$4 sm:$0xff]  }
 0x113   :  { %1131 = vmatprep.subr.bf16.mxu0 %v1769_v46  ;;  %1172 = vmatprep.subr.bf16.mxu1 %v1772_v47  ;;  %v1856_v46 = vld [vmem:[#allocation7 + $0x30c] ss:$16 sps:$4 sm:$0xff]   ;;  %v1851_v47 = vld [vmem:[#allocation7 + $0x108] ss:$16 sps:$4 sm:$0xff]  }
 0x115   :  { %1132 = vmatpush1.bf16.msra.mxu0 %v1767_v48  ;;  %1173 = vmatpush1.bf16.msra.mxu1 %v1770_v49  ;;  %v1854_v48 = vld [vmem:[#allocation7 + $0x308] ss:$16 sps:$4 sm:$0xff]  }
 0x116   :  { %1133 = vmatprep.subr.bf16.mxu0 %v1775_v50  ;;  %1174 = vmatprep.subr.bf16.mxu1 %v1778_v51  ;;  %v1246_v49 = vld [vmem:[#allocation9 + $0xf8] sm:$0xff]  ;;  %v1245_v51 = vld [vmem:[#allocation9 + $0xf0] sm:$0xff] }
 0x117   :  { %v1230_v50 = vld [vmem:[#allocation9 + $0x78] sm:$0xff] }
 0x119   :  { %1134 = vmatpush1.bf16.msra.mxu0 %v1773_v52  ;;  %1175 = vmatpush1.bf16.msra.mxu1 %v1776_v53  ;;  %v1229_v52 = vld [vmem:[#allocation9 + $0x70] sm:$0xff]  ;;  %v1244_v53 = vld [vmem:[#allocation9 + $0xe8] sm:$0xff] }
 0x11a   :  { %1135 = vmatprep.subr.bf16.mxu0 %v1781_v54  ;;  %1176 = vmatprep.subr.bf16.mxu1 %v1784_v55  ;;  %v1228_v54 = vld [vmem:[#allocation9 + $0x68] sm:$0xff]  ;;  %v1243_v55 = vld [vmem:[#allocation9 + $0xe0] sm:$0xff] }
 0x11d   :  { %1136 = vmatpush1.bf16.msra.mxu0 %v1779_v56  ;;  %1177 = vmatpush1.bf16.msra.mxu1 %v1782_v57  ;;  %v1227_v56 = vld [vmem:[#allocation9 + $0x60] sm:$0xff]  ;;  %v1242_v57 = vld [vmem:[#allocation9 + $0xd8] sm:$0xff] }
 0x11e   :  { %1137 = vmatprep.subr.bf16.mxu0 %v1787_v58  ;;  %1178 = vmatprep.subr.bf16.mxu1 %v1790_v59  ;;  %v1226_v58 = vld [vmem:[#allocation9 + $0x58] sm:$0xff]  ;;  %v1241_v59 = vld [vmem:[#allocation9 + $0xd0] sm:$0xff] }
 0x121   :  { %1138 = vmatpush1.bf16.msra.mxu0 %v1785_v60  ;;  %1179 = vmatpush1.bf16.msra.mxu1 %v1788_v61  ;;  %v1225_v60 = vld [vmem:[#allocation9 + $0x50] sm:$0xff]  ;;  %v1278_v61 = vld [vmem:[#allocation9 + $0x1f8] sm:$0xff] }
 0x122   :  { %1139 = vmatprep.subr.bf16.mxu0 %v1793_v62  ;;  %1180 = vmatprep.subr.bf16.mxu1 %v1796_v63  ;;  %v1262_v62 = vld [vmem:[#allocation9 + $0x178] sm:$0xff]  ;;  %v1277_v63 = vld [vmem:[#allocation9 + $0x1f0] sm:$0xff] }
 0x125   :  { %1140 = vmatpush1.bf16.msra.mxu0 %v1791_v0  ;;  %1181 = vmatpush1.bf16.msra.mxu1 %v1794_v1  ;;  %v1239_v0 = vld [vmem:[#allocation9 + $0xc0] sm:$0xff]  ;;  %v1261_v1 = vld [vmem:[#allocation9 + $0x170] sm:$0xff] }
 0x126   :  { %1141 = vmatprep.subr.bf16.mxu0 %v1799_v2  ;;  %1182 = vmatprep.subr.bf16.mxu1 %v1802_v3  ;;  %v1223_v2 = vld [vmem:[#allocation9 + $0x40] sm:$0xff]  ;;  %v1276_v3 = vld [vmem:[#allocation9 + $0x1e8] sm:$0xff] }
 0x129   :  { %1142 = vmatpush1.bf16.msra.mxu0 %v1797_v4  ;;  %1183 = vmatpush1.bf16.msra.mxu1 %v1800_v5  ;;  %v1238_v4 = vld [vmem:[#allocation9 + $0xb8] sm:$0xff]  ;;  %v1260_v5 = vld [vmem:[#allocation9 + $0x168] sm:$0xff] }
 0x12a   :  { %1143 = vmatprep.subr.bf16.mxu0 %v1805_v6  ;;  %1184 = vmatprep.subr.bf16.mxu1 %v1808_v7  ;;  %v1222_v6 = vld [vmem:[#allocation9 + $0x38] sm:$0xff]  ;;  %v1275_v7 = vld [vmem:[#allocation9 + $0x1e0] sm:$0xff] }
 0x12d   :  { %1144 = vmatpush1.bf16.msra.mxu0 %v1803_v8  ;;  %1185 = vmatpush1.bf16.msra.mxu1 %v1806_v9  ;;  %v1237_v8 = vld [vmem:[#allocation9 + $0xb0] sm:$0xff]  ;;  %v1259_v9 = vld [vmem:[#allocation9 + $0x160] sm:$0xff] }
 0x12e   :  { %1145 = vmatprep.subr.bf16.mxu0 %v1811_v10  ;;  %1186 = vmatprep.subr.bf16.mxu1 %v1814_v11  ;;  %v1221_v10 = vld [vmem:[#allocation9 + $0x30] sm:$0xff]  ;;  %v1274_v11 = vld [vmem:[#allocation9 + $0x1d8] sm:$0xff] }
 0x131   :  { %1146 = vmatpush2.bf16.msra.mxu0 %v1809_v12  ;;  %1187 = vmatpush2.bf16.msra.mxu1 %v1812_v13  ;;  %v1236_v12 = vld [vmem:[#allocation9 + $0xa8] sm:$0xff]  ;;  %v1258_v13 = vld [vmem:[#allocation9 + $0x158] sm:$0xff] }
 0x132   :  { %1147 = vmatprep.subr.bf16.mxu0 %v1817_v17  ;;  %1188 = vmatprep.subr.bf16.mxu1 %v1820_v20  ;;  %v1220_v17 = vld [vmem:[#allocation9 + $0x28] sm:$0xff]  ;;  %v1273_v20 = vld [vmem:[#allocation9 + $0x1d0] sm:$0xff] }
 0x135   :  { %1148 = vmatpush2.bf16.msra.mxu0 %v1815_v21  ;;  %1189 = vmatpush2.bf16.msra.mxu1 %v1818_v22  ;;  %v1235_v21 = vld [vmem:[#allocation9 + $0xa0] sm:$0xff]  ;;  %v1257_v22 = vld [vmem:[#allocation9 + $0x150] sm:$0xff] }
 0x136   :  { %1149 = vmatprep.subr.bf16.mxu0 %v1823_v23  ;;  %1190 = vmatprep.subr.bf16.mxu1 %v1826_v24  ;;  %v1219_v23 = vld [vmem:[#allocation9 + $0x20] sm:$0xff]  ;;  %v1272_v24 = vld [vmem:[#allocation9 + $0x1c8] sm:$0xff] }
 0x139   :  { %1150 = vmatpush2.bf16.msra.mxu0 %v1821_v25  ;;  %1191 = vmatpush2.bf16.msra.mxu1 %v1824_v26  ;;  %v1234_v25 = vld [vmem:[#allocation9 + $0x98] sm:$0xff]  ;;  %v1256_v26 = vld [vmem:[#allocation9 + $0x148] sm:$0xff] }
 0x13a   :  { %1151 = vmatprep.subr.bf16.mxu0 %v1829_v27  ;;  %1192 = vmatprep.subr.bf16.mxu1 %v1832_v28  ;;  %v1218_v27 = vld [vmem:[#allocation9 + $0x18] sm:$0xff]  ;;  %v1271_v28 = vld [vmem:[#allocation9 + $0x1c0] sm:$0xff] }
 0x13d   :  { %1152 = vmatpush2.bf16.msra.mxu0 %v1827_v29  ;;  %1193 = vmatpush2.bf16.msra.mxu1 %v1830_v30  ;;  %v1233_v29 = vld [vmem:[#allocation9 + $0x90] sm:$0xff]  ;;  %v1255_v30 = vld [vmem:[#allocation9 + $0x140] sm:$0xff] }
 0x13e   :  { %1153 = vmatprep.subr.bf16.mxu0 %v1835_v31  ;;  %1194 = vmatprep.subr.bf16.mxu1 %v1838_v32  ;;  %v1217_v31 = vld [vmem:[#allocation9 + $0x10] sm:$0xff]  ;;  %v1270_v32 = vld [vmem:[#allocation9 + $0x1b8] sm:$0xff] }
 0x141   :  { %1154 = vmatpush2.bf16.msra.mxu0 %v1833_v33  ;;  %1195 = vmatpush2.bf16.msra.mxu1 %v1836_v34  ;;  %v1232_v33 = vld [vmem:[#allocation9 + $0x88] sm:$0xff]  ;;  %v1254_v34 = vld [vmem:[#allocation9 + $0x138] sm:$0xff] }
 0x142   :  { %1155 = vmatprep.subr.bf16.mxu0 %v1841_v35  ;;  %1196 = vmatprep.subr.bf16.mxu1 %v1844_v36  ;;  %v1216_v35 = vld [vmem:[#allocation9 + $0x8] sm:$0xff]  ;;  %v1269_v36 = vld [vmem:[#allocation9 + $0x1b0] sm:$0xff] }
 0x145   :  { %1156 = vmatpush2.bf16.msra.mxu0 %v1839_v37  ;;  %1197 = vmatpush2.bf16.msra.mxu1 %v1842_v39  ;;  %v1231_v37 = vld [vmem:[#allocation9 + $0x80] sm:$0xff]  ;;  %v1253_v39 = vld [vmem:[#allocation9 + $0x130] sm:$0xff] }
 0x146   :  { %1157 = vmatprep.subr.bf16.mxu0 %v1847_v40  ;;  %1198 = vmatprep.subr.bf16.mxu1 %v1850_v41  ;;  %v1215_v40 = vld [vmem:[#allocation9] sm:$0xff]  ;;  %v1268_v41 = vld [vmem:[#allocation9 + $0x1a8] sm:$0xff] }
 0x149   :  { %1158 = vmatpush2.bf16.msra.mxu0 %v1845_v42  ;;  %1199 = vmatpush2.bf16.msra.mxu1 %v1848_v43  ;;  %v1252_v42 = vld [vmem:[#allocation9 + $0x128] sm:$0xff]  ;;  %v1267_v43 = vld [vmem:[#allocation9 + $0x1a0] sm:$0xff] }
 0x14a   :  { %1159 = vmatprep.subr.bf16.mxu0 %v1853_v44  ;;  %1200 = vmatprep.subr.bf16.mxu1 %v1856_v46  ;;  %v1251_v44 = vld [vmem:[#allocation9 + $0x120] sm:$0xff]  ;;  %v1266_v46 = vld [vmem:[#allocation9 + $0x198] sm:$0xff] }
 0x14d   :  { %1160 = vmatpush2.bf16.msra.mxu0 %v1851_v47  ;;  %1201 = vmatpush2.bf16.msra.mxu1 %v1854_v48  ;;  %v1250_v47 = vld [vmem:[#allocation9 + $0x118] sm:$0xff]  ;;  %v1265_v48 = vld [vmem:[#allocation9 + $0x190] sm:$0xff] }
 0x14e   :  { %1573 = vmatprep.subr.mxu0 %v1246_v49  ;;  %1608 = vmatprep.subr.mxu1 %v1278_v61  ;;  %v1249_v49 = vld [vmem:[#allocation9 + $0x110] sm:$0xff] }
 0x150   :  { %1162 = vmatmul.mubr.bf16.vlgmr.msra.gmra.mxu0 %v2044_v45  ;;  %1203 = vmatmul.mubr.bf16.vlgmr.msra.gmra.mxu1 %v2042_v38  ;;  %v1240_v45 = vld [vmem:[#allocation9 + $0xc8] sm:$0xff] }
 0x151   :  { %1574 = vmatpush3.msra.mxu0 %v1230_v50  ;;  %v1224_v38 = vld [vmem:[#allocation9 + $0x48] sm:$0xff]  ;;  %1609 = vmatpush3.msra.mxu1 %v1262_v62 }
 0x152   :  { %1575 = vmatprep.subr.mxu0 %v1245_v51  ;;  %1610 = vmatprep.subr.mxu1 %v1277_v63  ;;  %v1264_v50 = vld [vmem:[#allocation9 + $0x188] sm:$0xff] }
 0x153   :  { %1576 = vmatpush3.msra.mxu0 %v1229_v52  ;;  %1611 = vmatpush3.msra.mxu1 %v1261_v1  ;;  %v1248_v51 = vld [vmem:[#allocation9 + $0x108] sm:$0xff]  ;;  %v1263_v52 = vld [vmem:[#allocation9 + $0x180] sm:$0xff] }
 0x154   :  { %1577 = vmatprep.subr.mxu0 %v1244_v53  ;;  %1612 = vmatprep.subr.mxu1 %v1276_v3  ;;  %v1247_v53 = vld [vmem:[#allocation9 + $0x100] sm:$0xff] }
 0x155   :  { %1578 = vmatpush3.msra.mxu0 %v1228_v54  ;;  %1613 = vmatpush3.msra.mxu1 %v1260_v5  ;;  %v385_v54 = vld [vmem:[%s2071_s4] sm:$0xf] }
 0x156   :  { %1579 = vmatprep.subr.mxu0 %v1243_v55  ;;  %1614 = vmatprep.subr.mxu1 %v1275_v7  ;;  %v390_v55 = vrot.slane %v385_v54, %v105_v15  ;;  %v398_v15 = vrot.slane %v385_v54, %v113_v16 }
 0x157   :  { %1580 = vmatpush3.msra.mxu0 %v1227_v56  ;;  %1615 = vmatpush3.msra.mxu1 %v1259_v9  ;;  %v394_v56 = vrot.slane %v385_v54, %v109_v18  ;;  %v402_v18 = vrot.slane %v385_v54, %v117_v19  ;;  %v1572_v19 = vld [vmem:[%s2073_s6] ss:$0 sm:$0xff] }
 0x158   :  { %1581 = vmatprep.subr.mxu0 %v1242_v57  ;;  %1616 = vmatprep.subr.mxu1 %v1274_v11 }
 0x159   :  { %1582 = vmatpush3.msra.mxu0 %v1226_v58  ;;  %1617 = vmatpush3.msra.mxu1 %v1258_v13 }
 0x15a   :  { %1583 = vmatprep.subr.mxu0 %v1241_v59  ;;  %1618 = vmatprep.subr.mxu1 %v1273_v20 }
 0x15b   :  { %1584 = vmatpush3.msra.mxu0 %v1225_v60  ;;  %1619 = vmatpush3.msra.mxu1 %v1257_v22 }
 0x15c   :  { %1585 = vmatprep.subr.mxu0 %v1240_v45  ;;  %1620 = vmatprep.subr.mxu1 %v1272_v24 }
 0x15d   :  { %1586 = vmatpush3.msra.mxu0 %v1224_v38  ;;  %1621 = vmatpush3.msra.mxu1 %v1256_v26 }
 0x15e   :  { %1587 = vmatprep.subr.mxu0 %v1239_v0  ;;  %1622 = vmatprep.subr.mxu1 %v1271_v28 }
 0x15f   :  { %1588 = vmatpush3.msra.mxu0 %v1223_v2  ;;  %1623 = vmatpush3.msra.mxu1 %v1255_v30 }
 0x160   :  { %1589 = vmatprep.subr.mxu0 %v1238_v4  ;;  %1624 = vmatprep.subr.mxu1 %v1270_v32 }
 0x161   :  { %1590 = vmatpush3.msra.mxu0 %v1222_v6  ;;  %1625 = vmatpush3.msra.mxu1 %v1254_v34 }
 0x162   :  { %1591 = vmatprep.subr.mxu0 %v1237_v8  ;;  %1626 = vmatprep.subr.mxu1 %v1269_v36 }
 0x163   :  { %1592 = vmatpush3.msra.mxu0 %v1221_v10  ;;  %1627 = vmatpush3.msra.mxu1 %v1253_v39 }
 0x164   :  { %1593 = vmatprep.subr.mxu0 %v1236_v12  ;;  %1628 = vmatprep.subr.mxu1 %v1268_v41 }
 0x165   :  { %1594 = vmatpush3.msra.mxu0 %v1220_v17  ;;  %1629 = vmatpush3.msra.mxu1 %v1252_v42 }
 0x166   :  { %1595 = vmatprep.subr.mxu0 %v1235_v21  ;;  %1630 = vmatprep.subr.mxu1 %v1267_v43 }
 0x167   :  { %1596 = vmatpush3.msra.mxu0 %v1219_v23  ;;  %1631 = vmatpush3.msra.mxu1 %v1251_v44 }
 0x168   :  { %1597 = vmatprep.subr.mxu0 %v1234_v25  ;;  %1632 = vmatprep.subr.mxu1 %v1266_v46 }
 0x169   :  { %1598 = vmatpush3.msra.mxu0 %v1218_v27  ;;  %1633 = vmatpush3.msra.mxu1 %v1250_v47 }
 0x16a   :  { %1599 = vmatprep.subr.mxu0 %v1233_v29  ;;  %1634 = vmatprep.subr.mxu1 %v1265_v48 }
 0x16b   :  { %1600 = vmatpush3.msra.mxu0 %v1217_v31  ;;  %1635 = vmatpush3.msra.mxu1 %v1249_v49 }
 0x16c   :  { %1601 = vmatprep.subr.mxu0 %v1232_v33  ;;  %1636 = vmatprep.subr.mxu1 %v1264_v50 }
 0x16d   :  { %1602 = vmatpush3.msra.mxu0 %v1216_v35  ;;  %1637 = vmatpush3.msra.mxu1 %v1248_v51 }
 0x16e   :  { %1603 = vmatprep.subr.mxu0 %v1231_v37  ;;  %1638 = vmatprep.subr.mxu1 %v1263_v52 }
 0x16f   :  { %1604 = vmatpush3.msra.mxu0 %v1215_v40  ;;  %1639 = vmatpush3.msra.mxu1 %v1247_v53 }
 0x1d0   :  { %v1081_v57 = vpop.f32.mrf.mxu0  ;;  %v1122_v58 = vpop.f32.mrf.mxu1 }
 0x1d1   :  { %v1082_v59 = vadd.f32 %v1081_v57, %v390_v55 }
 0x1d2   :  { %v1083_v60 = vpop.f32.mrf.mxu0  ;;  %v1124_v45 = vpop.f32.mrf.mxu1 }
 0x1d3   :  { %v1084_v38 = vadd.f32 %v1083_v60, %v394_v56  ;;  %v1123_v61 = vadd.f32 %v1122_v58, %v1082_v59 }
 0x1d4   :  { %v1085_v62 = vpop.f32.mrf.mxu0  ;;  %v1126_v63 = vpop.f32.mrf.mxu1 }
 0x1d5   :  { %v1125_v0 = vadd.f32 %v1124_v45, %v1084_v38  ;;  %v1211_v4 = vmax.f32 %v1123_v61, 0.0 }
 0x1d6   :  { %v1086_v1 = vpop.f32.mrf.mxu0  ;;  %v1127_v2 = vpop.f32.mrf.mxu1 }
 0x1d7   :  { %v1212_v3 = vmax.f32 %v1125_v0, 0.0 }
 0x1d9   :  { %1350 = vmatprep.mubr.f32.mxu0 %v1212_v3 }
 0x1da   :  { %1351 = vmatmul.mubr.f32.vlgmr.msra.gmra.mxu0 %v1211_v4 }
 0x210   :  { %v1163_v5 = vpop.f32.mrf.mxu0  ;;  %v1204_v6 = vpop.f32.mrf.mxu1 }
 0x211   :  { %v1164_v7 = vadd.f32 %v1163_v5, %v398_v15 }
 0x212   :  { %v1165_v8 = vpop.f32.mrf.mxu0  ;;  %v1206_v9 = vpop.f32.mrf.mxu1 }
 0x213   :  { %v1166_v10 = vadd.f32 %v1165_v8, %v402_v18  ;;  %v1205_v11 = vadd.f32 %v1204_v6, %v1164_v7 }
 0x214   :  { %v1167_v12 = vpop.f32.mrf.mxu0  ;;  %v1208_v13 = vpop.f32.mrf.mxu1 }
 0x215   :  { %v1207_v17 = vadd.f32 %v1206_v9, %v1166_v10  ;;  %v1213_v23 = vmax.f32 %v1205_v11, 0.0 }
 0x216   :  { %v1168_v20 = vpop.f32.mrf.mxu0  ;;  %v1209_v21 = vpop.f32.mrf.mxu1 }
 0x217   :  { %v1214_v22 = vmax.f32 %v1207_v17, 0.0 }
 0x219   :  { %1420 = vmatprep.mubr.f32.mxu1 %v1214_v22 }
 0x21a   :  { %1421 = vmatmul.mubr.f32.vlgmr.msra.gmra.mxu1 %v1213_v23 }
 0x29a   :  { %v1605_v16 = vpop.f32.mrf.mxu0 }
 0x29c   :  { %v1606_v24 = vpop.f32.mrf.mxu0 }
 0x29d   :  { %v1607_v14 = vadd.f32 %v1606_v24, %v1605_v16 }
 0x29f   :  { %v1353_v27 = vadd.f32 %v1607_v14, %v1572_v19 }
 0x2da   :  { %v1640_v25 = vpop.f32.mrf.mxu1 }
 0x2dc   :  { %v1641_v26 = vpop.f32.mrf.mxu1 }
 0x2dd   :  { %v1642_v28 = vadd.f32 %v1641_v26, %v1640_v25 }
 0x2df   :  { %v1423_v29 = vadd.f32 %v1642_v28, %v1353_v27 }
 0x2e1   :  { %1426 = vst [vmem:[%s2074_s7] sm:$0xff] %v1423_v29 }
 0x2e2   :  { %1431 = vsyncpa [#allocation3], 1 }
 0x2e3   :  { %1432 = vsyncpa [#allocation5], 1 }
 0x2e4   :  { %1433 = vsyncpa [#allocation8], 1 }

</bundles_post_ra>
